<compile_context>
chip_gen: v5e
topology: v5e:2x2
jax: 0.10.0
libtpu: 0.0.40
codegen_flags: <defaults>
</compile_context>

<pallas_src>
import functools
import math

import jax
import jax.numpy as jnp
from jax.experimental import pallas as pl
from jax.experimental.pallas import tpu as pltpu

_MIB = 1024 * 1024


# ----------------------------------------------------------------------------
# Generation-aware tiling helpers
# ----------------------------------------------------------------------------
def _vmem_capacity_bytes():
    """Physical per-TensorCore VMEM; conservative v7x default if unknown."""
    try:
        return int(pltpu.get_tpu_info().vmem_capacity_bytes)
    except Exception:
        return 64 * _MIB


def _sublane_multiple(itemsize):
    # f32 -> 8, bf16 -> 16, int8/fp8 -> 32 (sub-32-bit dtypes pack on sublanes).
    return max(8, 32 // max(1, int(itemsize)))


def _round_up(x, m):
    return ((x + m - 1) // m) * m


def _pick_q_tile(S, itemsize, max_tile):
    """Return (TQ, S_pad): query-tile size and (possibly padded) seq length."""
    mult = _sublane_multiple(itemsize)
    if S <= max_tile:
        return S, S                              # one tile == full (unpadded) dim
    top = (max_tile // mult) * mult
    for cand in range(top, mult - 1, -mult):     # prefer an exact divisor
        if S % cand == 0:
            return cand, S
    return top, _round_up(S, top)                # pad + mask, never TQ = S


def _plan(S, D, itemsize, attn_itemsize, with_attention):
    """Pick (TQ, S_pad, vmem_limit_bytes) from the device's VMEM capacity."""
    cap = _vmem_capacity_bytes()
    # v7x: 64 MiB/TC -> modest tiles.  v5e/v6e: 128 MiB -> larger tiles amortize
    # the ~0.35us/grid-step overhead and keep the (v6e) 256-wide MXU fed.
    max_tile = 128 if cap <= 64 * _MIB else 256
    mult = _sublane_multiple(itemsize)
    while True:
        TQ, S_pad = _pick_q_tile(S, itemsize, max_tile)
        est = (
            2 * S_pad * D * itemsize                   # x block (double-buffered)
            + S_pad * 2 * D * itemsize                 # persistent K/V scratch
            + 2 * (4 * D * D + 6 * D) * itemsize       # weights/biases (2 bufs each)
            + 2 * TQ * D * itemsize                    # out block (double-buffered)
            + (2 * TQ * S_pad * attn_itemsize if with_attention else 0)
            + 4 * TQ * S_pad * 4                       # one head's f32 scores + attn acc
            + 4 * TQ * D * 4                           # q tile + f32 out accumulator
        )
        if est <= int(0.8 * cap) or TQ <= mult:
            break
        max_tile = max(mult, max_tile // 2)
    vmem_limit = int(min(max(est + 16 * _MIB, 32 * _MIB), int(0.9 * cap)))
    return TQ, S_pad, vmem_limit


# ----------------------------------------------------------------------------
# Kernel
# ----------------------------------------------------------------------------
def _mha_kernel(x_ref, wq_ref, bq_ref, wkv_ref, bkv_ref, wo_ref, bo_ref,
                out_ref, *rest, num_heads, head_dim, seq_len, q_tile, q_tiles,
                with_attention):
    if with_attention:
        attn_ref, kv_scratch = rest
    else:
        attn_ref = None
        (kv_scratch,) = rest

    in_dtype = x_ref.dtype
    D = num_heads * head_dim
    S_pad = x_ref.shape[1]
    TQ = q_tile
    qi = pl.program_id(1)

    # --- K/V projection: ONCE per batch element, kept resident in VMEM for all
    #     query tiles of that batch element (qi axis is "arbitrary"). ----------
    @pl.when(qi == 0)
    def _():
        kv = (jnp.dot(x_ref[0], wkv_ref[...],
                      preferred_element_type=jnp.float32) + bkv_ref[...])
        kv_scratch[...] = kv.astype(kv_scratch.dtype)

    # --- Q projection for this tile only.  The 1/sqrt(head_dim) softmax scale
    #     is already folded into wq/bq host-side.  Query rows are sliced from
    #     the resident full-sequence x block (no separate xq input stream). ----
    if q_tiles == 1:
        xq = x_ref[0]                                            # (TQ, D), TQ == S_pad
    else:
        q_start = pl.multiple_of(qi * TQ, TQ)
        xq = x_ref[0, pl.ds(q_start, TQ), :]                     # (TQ, D)
    q = (jnp.dot(xq, wq_ref[...], preferred_element_type=jnp.float32)
         + bq_ref[...]).astype(in_dtype)                         # (TQ, D)

    if S_pad != seq_len:   # static: mask padded key columns
        key_mask = jax.lax.broadcasted_iota(jnp.int32, (TQ, S_pad), 1) < seq_len

    out_acc = jnp.zeros((TQ, D), jnp.float32)
    attn_acc = jnp.zeros((TQ, S_pad), jnp.float32) if with_attention else None

    # --- Stream heads: only one head's (TQ, S) f32 score/exp/prob tile is live
    #     at a time; head-concat + output projection are fused into a per-head
    #     matmul against W_out[h] accumulated in f32. --------------------------
    for h in range(num_heads):
        lo, hi = h * head_dim, (h + 1) * head_dim
        q_h = q[:, lo:hi]                                        # (TQ, hd)
        k_h = kv_scratch[:, lo:hi]                               # (S_pad, hd)
        v_h = kv_scratch[:, D + lo:D + hi]                       # (S_pad, hd)

        s_h = jnp.einsum('qd,kd->qk', q_h, k_h,
                         preferred_element_type=jnp.float32)     # (TQ, S_pad) f32
        if S_pad != seq_len:
            s_h = jnp.where(key_mask, s_h, -1e30)
        s_h = s_h - jnp.max(s_h, axis=-1, keepdims=True)
        e_h = jnp.exp(s_h)                                       # EUP
        p_h = e_h * pl.reciprocal(jnp.sum(e_h, axis=-1, keepdims=True),
                                  approx=False)                  # (TQ, S_pad)

        pv_h = jnp.dot(p_h.astype(in_dtype), v_h,
                       preferred_element_type=jnp.float32)       # (TQ, hd)
        out_acc = out_acc + jnp.dot(pv_h.astype(in_dtype), wo_ref[h],
                                    preferred_element_type=jnp.float32)
        if with_attention:
            attn_acc = attn_acc + p_h

    out_ref[0] = (out_acc + bo_ref[...]).astype(out_ref.dtype)
    if with_attention:
        attn_ref[0] = (attn_acc * (1.0 / num_heads)).astype(attn_ref.dtype)


# ----------------------------------------------------------------------------
# Wrapper
# ----------------------------------------------------------------------------
def multi_head_attention(x, w_qkv, b_qkv, w_out, b_out, num_heads, *,
                         with_attention=True, attn_dtype=None):
    """Forward pass of MultiHeadAttention (intended head-merge semantics).

    w_qkv is the PyTorch nn.Linear(d_model, 3*d_model) weight (out, in),
    laid out head-major with contiguous [q | k | v] blocks of head_dim per
    head -- exactly the layout the reference module's reshape/chunk implies.
    """
    if x.ndim == 2:                         # mirror the PyTorch unsqueeze
        x = x[None]
    B, S, D = x.shape
    assert D % num_heads == 0, "d_model must be divisible by num_heads"
    hd = D // num_heads
    assert w_qkv.shape == (3 * D, D) and w_out.shape == (D, D)

    dtype = x.dtype
    attn_dtype = dtype if attn_dtype is None else attn_dtype
    itemsize = jnp.dtype(dtype).itemsize
    attn_itemsize = jnp.dtype(attn_dtype).itemsize

    # --- host-side weight prep ------------------------------------------------
    # Reorder the fused QKV rows into [Q heads | K heads | V heads] slabs
    # (each head-major) so in-kernel q/k/v are contiguous lane slabs.
    idx = (jnp.arange(3)[:, None, None] * hd
           + jnp.arange(num_heads)[None, :, None] * (3 * hd)
           + jnp.arange(hd)[None, None, :]).reshape(-1)
    w_r = w_qkv[idx]
    b_r = b_qkv[idx]
    scale = 1.0 / math.sqrt(hd)                              # folded into Q proj
    w_q = (w_r[:D].T * scale).astype(dtype)                  # (D, D)   (in, out)
    b_q = (b_r[:D] * scale).reshape(1, D).astype(dtype)
    w_kv = w_r[D:].T.astype(dtype)                           # (D, 2D)  [K | V]
    b_kv = b_r[D:].reshape(1, 2 * D).astype(dtype)
    w_o = w_out.T.reshape(num_heads, hd, D).astype(dtype)    # per-head (hd, D)
    b_o = b_out.reshape(1, D).astype(dtype)

    # --- tiling / VMEM plan ----------------------------------------------------
    TQ, S_pad, vmem_limit = _plan(S, D, itemsize, attn_itemsize, with_attention)
    QT = S_pad // TQ
    x_in = x if S_pad == S else jnp.pad(x, ((0, 0), (0, S_pad - S), (0, 0)))

    kernel = functools.partial(
        _mha_kernel, num_heads=num_heads, head_dim=hd, seq_len=S,
        q_tile=TQ, q_tiles=QT, with_attention=with_attention)

    out_shapes = [jax.ShapeDtypeStruct((B, S_pad, D), dtype)]
    out_specs = [pl.BlockSpec((1, TQ, D), lambda b, qi: (b, qi, 0))]
    if with_attention:
        out_shapes.append(jax.ShapeDtypeStruct((B, S_pad, S_pad), attn_dtype))
        out_specs.append(pl.BlockSpec((1, TQ, S_pad), lambda b, qi: (b, qi, 0)))

    results = pl.pallas_call(
        kernel,
        out_shape=tuple(out_shapes),
        grid_spec=pltpu.PrefetchScalarGridSpec(
            num_scalar_prefetch=0,
            grid=(B, QT),
            in_specs=[
                # Full-sequence x block: index constant over qi, so its DMA is
                # issued once per batch element; used for K/V (qi==0) + q rows.
                pl.BlockSpec((1, S_pad, D), lambda b, qi: (b, 0, 0)),
                pl.BlockSpec((D, D), lambda b, qi: (0, 0)),             # W_q
                pl.BlockSpec((1, D), lambda b, qi: (0, 0)),             # b_q
                pl.BlockSpec((D, 2 * D), lambda b, qi: (0, 0)),         # W_kv
                pl.BlockSpec((1, 2 * D), lambda b, qi: (0, 0)),         # b_kv
                pl.BlockSpec((num_heads, hd, D), lambda b, qi: (0, 0, 0)),  # W_out
                pl.BlockSpec((1, D), lambda b, qi: (0, 0)),             # b_out
            ],
            out_specs=tuple(out_specs),
            # Persistent K/V of one batch element, reused across query tiles.
            scratch_shapes=[pltpu.VMEM((S_pad, 2 * D), dtype)],
        ),
        compiler_params=pltpu.CompilerParams(
            # qi carries the persistent K/V scratch -> "arbitrary";
            # b is independent -> "parallel" (megacore sharding).
            dimension_semantics=("parallel", "arbitrary"),
            vmem_limit_bytes=vmem_limit),
    )(x_in, w_q, b_q, w_kv, b_kv, w_o, b_o)

    if with_attention:
        out, attn = results
    else:
        out = results[0] if isinstance(results, (tuple, list)) else results
        attn = None

    if S_pad != S:
        out = out[:, :S, :]
        if attn is not None:
            attn = attn[:, :S, :S]
    return (out, attn) if with_attention else out


# ----------------------------------------------------------------------------
# Pure-JAX reference + self-test
# ----------------------------------------------------------------------------
def reference_mha(x, w_qkv, b_qkv, w_out, b_out, num_heads):
    """Pure-JAX reference (intended multi-head attention semantics)."""
    B, S, D = x.shape
    hd = D // num_heads
    qkv = x @ w_qkv.T + b_qkv
    qkv = qkv.reshape(B, S, num_heads, 3 * hd).transpose(0, 2, 1, 3)
    q, k, v = qkv[..., :hd], qkv[..., hd:2 * hd], qkv[..., 2 * hd:]
    s = jnp.einsum('bhqd,bhkd->bhqk', q, k) / math.sqrt(hd)
    attn = jax.nn.softmax(s, axis=-1)
    vals = jnp.einsum('bhqk,bhkd->bhqd', attn, v)
    vals = vals.transpose(0, 2, 1, 3).reshape(B, S, D)
    out = vals @ w_out.T + b_out
    return out, attn.mean(axis=1)


def _make_params(key, d_model):
    k1, k2, k3, k4 = jax.random.split(key, 4)
    bound = 1.0 / math.sqrt(d_model)
    w_qkv = jax.random.uniform(k1, (3 * d_model, d_model), jnp.float32, -bound, bound)
    b_qkv = jax.random.uniform(k2, (3 * d_model,), jnp.float32, -bound, bound)
    w_out = jax.random.uniform(k3, (d_model, d_model), jnp.float32, -bound, bound)
    b_out = jax.random.uniform(k4, (d_model,), jnp.float32, -bound, bound)
    return w_qkv, b_qkv, w_out, b_out


if __name__ == "__main__":
    root = jax.random.PRNGKey(0)

    # --- primary check: the module's nominal small shapes ----------------------
    B, S, d_model, num_heads = 2, 8, 32, 4
    kx, kp = jax.random.split(root)
    x = jax.random.normal(kx, (B, S, d_model), dtype=jnp.float32)
    params = _make_params(kp, d_model)

    out, attn = multi_head_attention(x, *params, num_heads)
    out, attn = jax.block_until_ready(out), jax.block_until_ready(attn)
    ref_out, ref_attn = reference_mha(x, *params, num_heads)
    assert out.shape == (B, S, d_model) and attn.shape == (B, S, S)
    assert jnp.allclose(out, ref_out, atol=1e-4, rtol=1e-4)
    assert jnp.allclose(attn, ref_attn, atol=2e-5, rtol=1e-4)

    # --- secondary check: exercises the multi-tile grid, persistent K/V reuse
    #     across qi, and the pad+mask path (S=300 has no multiple-of-8 divisor).
    B2, S2, d2, h2 = 1, 300, 32, 4
    kx2, kp2 = jax.random.split(jax.random.fold_in(root, 1))
    x2 = jax.random.normal(kx2, (B2, S2, d2), dtype=jnp.float32)
    params2 = _make_params(kp2, d2)
    out2, attn2 = multi_head_attention(x2, *params2, h2)
    out2, attn2 = jax.block_until_ready(out2), jax.block_until_ready(attn2)
    ref_out2, ref_attn2 = reference_mha(x2, *params2, h2)
    assert out2.shape == (B2, S2, d2) and attn2.shape == (B2, S2, S2)
    assert jnp.allclose(out2, ref_out2, atol=1e-4, rtol=1e-4)
    assert jnp.allclose(attn2, ref_attn2, atol=2e-5, rtol=1e-4)

    print("KERNEL_OK")
</pallas_src>

<mosaic_0001>
module attributes {stable_mosaic.version = 11 : i64} {
  func.func @_mha_kernel(%arg0: i32, %arg1: i32, %arg2: memref<1x8x32xf32, #tpu.memory_space<vmem>>, %arg3: memref<32x32xf32, #tpu.memory_space<vmem>>, %arg4: memref<1x32xf32, #tpu.memory_space<vmem>>, %arg5: memref<32x64xf32, #tpu.memory_space<vmem>>, %arg6: memref<1x64xf32, #tpu.memory_space<vmem>>, %arg7: memref<4x8x32xf32, #tpu.memory_space<vmem>>, %arg8: memref<1x32xf32, #tpu.memory_space<vmem>>, %arg9: memref<1x8x32xf32, #tpu.memory_space<vmem>>, %arg10: memref<1x8x8xf32, #tpu.memory_space<vmem>>, %arg11: memref<8x64xf32, #tpu.memory_space<vmem>>) attributes {dimension_semantics = [#tpu.dimension_semantics<parallel>, #tpu.dimension_semantics<arbitrary>], iteration_bounds = array<i64: 2, 1>, scalar_prefetch = 0 : i64, scratch_operands = 1 : i64, tpu.core_type = #tpu.core_type<tc>, window_params = [{transform_indices = @transform_0, window_bounds = array<i64: 1, 8, 32>}, {pipeline_mode = #tpu.pipeline_mode<synchronous>, transform_indices = @transform_1, window_bounds = array<i64: 32, 32>}, {pipeline_mode = #tpu.pipeline_mode<synchronous>, transform_indices = @transform_2, window_bounds = array<i64: 1, 32>}, {pipeline_mode = #tpu.pipeline_mode<synchronous>, transform_indices = @transform_3, window_bounds = array<i64: 32, 64>}, {pipeline_mode = #tpu.pipeline_mode<synchronous>, transform_indices = @transform_4, window_bounds = array<i64: 1, 64>}, {pipeline_mode = #tpu.pipeline_mode<synchronous>, transform_indices = @transform_5, window_bounds = array<i64: 4, 8, 32>}, {pipeline_mode = #tpu.pipeline_mode<synchronous>, transform_indices = @transform_6, window_bounds = array<i64: 1, 32>}, {transform_indices = @transform_7, window_bounds = array<i64: 1, 8, 32>}, {transform_indices = @transform_8, window_bounds = array<i64: 1, 8, 8>}]} {
    %c0_i32 = arith.constant 0 : i32
    %0 = arith.cmpi eq, %arg1, %c0_i32 : i32
    %1 = arith.extui %0 : i1 to i32
    %c0_i32_0 = arith.constant 0 : i32
    %2 = arith.cmpi ne, %1, %c0_i32_0 : i32
    scf.if %2 {
      %c0_56 = arith.constant 0 : index
      %c0_57 = arith.constant 0 : index
      %c0_58 = arith.constant 0 : index
      %103 = vector.load %arg2[%c0_56, %c0_57, %c0_58] : memref<1x8x32xf32, #tpu.memory_space<vmem>>, vector<1x8x32xf32>
      %104 = vector.shape_cast %103 : vector<1x8x32xf32> to vector<8x32xf32>
      %c0_59 = arith.constant 0 : index
      %c0_60 = arith.constant 0 : index
      %105 = vector.load %arg5[%c0_59, %c0_60] : memref<32x64xf32, #tpu.memory_space<vmem>>, vector<32x64xf32>
      %cst_61 = arith.constant dense<0.000000e+00> : vector<8x64xf32>
      %106 = tpu.matmul %104, %105, %cst_61 {dimension_numbers = #tpu.dot_dimension_numbers<[1], [0], [0], [1], [0, 0, 1, 1], [], []>} : vector<8x32xf32>, vector<32x64xf32>, vector<8x64xf32> -> vector<8x64xf32>
      %c0_62 = arith.constant 0 : index
      %c0_63 = arith.constant 0 : index
      %107 = vector.load %arg6[%c0_62, %c0_63] : memref<1x64xf32, #tpu.memory_space<vmem>>, vector<1x64xf32>
      %108 = vector.broadcast %107 : vector<1x64xf32> to vector<8x64xf32>
      %109 = arith.addf %106, %108 : vector<8x64xf32>
      %c0_64 = arith.constant 0 : index
      %c0_65 = arith.constant 0 : index
      %110 = vector.load %arg11[%c0_64, %c0_65] : memref<8x64xf32, #tpu.memory_space<vmem>>, vector<8x64xf32>
      tpu.vector_store %arg11[%c0_64, %c0_65], %109 {strides = array<i32>} : memref<8x64xf32, #tpu.memory_space<vmem>>, vector<8x64xf32>,
    } else {
    }
    %c0 = arith.constant 0 : index
    %c0_1 = arith.constant 0 : index
    %c0_2 = arith.constant 0 : index
    %3 = vector.load %arg2[%c0, %c0_1, %c0_2] : memref<1x8x32xf32, #tpu.memory_space<vmem>>, vector<1x8x32xf32>
    %4 = vector.shape_cast %3 : vector<1x8x32xf32> to vector<8x32xf32>
    %c0_3 = arith.constant 0 : index
    %c0_4 = arith.constant 0 : index
    %5 = vector.load %arg3[%c0_3, %c0_4] : memref<32x32xf32, #tpu.memory_space<vmem>>, vector<32x32xf32>
    %cst = arith.constant dense<0.000000e+00> : vector<8x32xf32>
    %6 = tpu.matmul %4, %5, %cst {dimension_numbers = #tpu.dot_dimension_numbers<[1], [0], [0], [1], [0, 0, 1, 1], [], []>} : vector<8x32xf32>, vector<32x32xf32>, vector<8x32xf32> -> vector<8x32xf32>
    %c0_5 = arith.constant 0 : index
    %c0_6 = arith.constant 0 : index
    %7 = vector.load %arg4[%c0_5, %c0_6] : memref<1x32xf32, #tpu.memory_space<vmem>>, vector<1x32xf32>
    %8 = vector.broadcast %7 : vector<1x32xf32> to vector<8x32xf32>
    %9 = arith.addf %6, %8 : vector<8x32xf32>
    %cst_7 = arith.constant 0.000000e+00 : f32
    %10 = vector.broadcast %cst_7 : f32 to vector<8x32xf32>
    %cst_8 = arith.constant 0.000000e+00 : f32
    %11 = vector.broadcast %cst_8 : f32 to vector<8x8xf32>
    %12 = vector.extract_strided_slice %9 {offsets = [0, 0], sizes = [8, 8], strides = [1, 1]} : vector<8x32xf32> to vector<8x8xf32>
    %c0_9 = arith.constant 0 : index
    %c0_10 = arith.constant 0 : index
    %13 = vector.load %arg11[%c0_9, %c0_10] : memref<8x64xf32, #tpu.memory_space<vmem>>, vector<8x8xf32>
    %c0_11 = arith.constant 0 : index
    %c32 = arith.constant 32 : index
    %14 = vector.load %arg11[%c0_11, %c32] : memref<8x64xf32, #tpu.memory_space<vmem>>, vector<8x8xf32>
    "tpu.trace_start"() <{level = 10 : i32, message = "qd,kd->qk"}> : () -> ()
    %cst_12 = arith.constant dense<0.000000e+00> : vector<8x8xf32>
    %15 = tpu.matmul %12, %13, %cst_12 {dimension_numbers = #tpu.dot_dimension_numbers<[1], [1], [0], [0], [0, 0, 1, 0], [], []>} : vector<8x8xf32>, vector<8x8xf32>, vector<8x8xf32> -> vector<8x8xf32>
    "tpu.trace_stop"() : () -> ()
    %cst_13 = arith.constant dense<0xFF800000> : vector<8xf32>
    %16 = vector.multi_reduction <maximumf>, %15, %cst_13 [1] : vector<8x8xf32> to vector<8xf32>
    %17 = vector.shape_cast %16 : vector<8xf32> to vector<8x1xf32>
    %18 = vector.broadcast %17 : vector<8x1xf32> to vector<8x8xf32>
    %19 = arith.subf %15, %18 : vector<8x8xf32>
    %20 = math.exp %19 : vector<8x8xf32>
    %cst_14 = arith.constant dense<0.000000e+00> : vector<8xf32>
    %21 = vector.multi_reduction <add>, %20, %cst_14 [1] : vector<8x8xf32> to vector<8xf32>
    %22 = vector.shape_cast %21 : vector<8xf32> to vector<8x1xf32>
    %23 = tpu.reciprocal %22 : vector<8x1xf32> -> vector<8x1xf32>
    %24 = vector.broadcast %23 : vector<8x1xf32> to vector<8x8xf32>
    %25 = arith.mulf %20, %24 : vector<8x8xf32>
    %cst_15 = arith.constant dense<0.000000e+00> : vector<8x8xf32>
    %26 = tpu.matmul %25, %14, %cst_15 {dimension_numbers = #tpu.dot_dimension_numbers<[1], [0], [0], [1], [0, 0, 1, 1], [], []>} : vector<8x8xf32>, vector<8x8xf32>, vector<8x8xf32> -> vector<8x8xf32>
    %c0_16 = arith.constant 0 : index
    %c0_17 = arith.constant 0 : index
    %c0_18 = arith.constant 0 : index
    %27 = vector.load %arg7[%c0_16, %c0_17, %c0_18] : memref<4x8x32xf32, #tpu.memory_space<vmem>>, vector<1x8x32xf32>
    %28 = vector.shape_cast %27 : vector<1x8x32xf32> to vector<8x32xf32>
    %cst_19 = arith.constant dense<0.000000e+00> : vector<8x32xf32>
    %29 = tpu.matmul %26, %28, %cst_19 {dimension_numbers = #tpu.dot_dimension_numbers<[1], [0], [0], [1], [0, 0, 1, 1], [], []>} : vector<8x8xf32>, vector<8x32xf32>, vector<8x32xf32> -> vector<8x32xf32>
    %30 = arith.addf %10, %29 : vector<8x32xf32>
    %31 = arith.addf %11, %25 : vector<8x8xf32>
    %32 = vector.extract_strided_slice %9 {offsets = [0, 8], sizes = [8, 8], strides = [1, 1]} : vector<8x32xf32> to vector<8x8xf32>
    %c0_20 = arith.constant 0 : index
    %c8 = arith.constant 8 : index
    %33 = vector.load %arg11[%c0_20, %c8] : memref<8x64xf32, #tpu.memory_space<vmem>>, vector<8x8xf32>
    %c0_21 = arith.constant 0 : index
    %c40 = arith.constant 40 : index
    %34 = vector.load %arg11[%c0_21, %c40] : memref<8x64xf32, #tpu.memory_space<vmem>>, vector<8x8xf32>
    "tpu.trace_start"() <{level = 10 : i32, message = "qd,kd->qk"}> : () -> ()
    %cst_22 = arith.constant dense<0.000000e+00> : vector<8x8xf32>
    %35 = tpu.matmul %32, %33, %cst_22 {dimension_numbers = #tpu.dot_dimension_numbers<[1], [1], [0], [0], [0, 0, 1, 0], [], []>} : vector<8x8xf32>, vector<8x8xf32>, vector<8x8xf32> -> vector<8x8xf32>
    "tpu.trace_stop"() : () -> ()
    %cst_23 = arith.constant dense<0xFF800000> : vector<8xf32>
    %36 = vector.multi_reduction <maximumf>, %35, %cst_23 [1] : vector<8x8xf32> to vector<8xf32>
    %37 = vector.shape_cast %36 : vector<8xf32> to vector<8x1xf32>
    %38 = vector.broadcast %37 : vector<8x1xf32> to vector<8x8xf32>
    %39 = arith.subf %35, %38 : vector<8x8xf32>
    %40 = math.exp %39 : vector<8x8xf32>
    %cst_24 = arith.constant dense<0.000000e+00> : vector<8xf32>
    %41 = vector.multi_reduction <add>, %40, %cst_24 [1] : vector<8x8xf32> to vector<8xf32>
    %42 = vector.shape_cast %41 : vector<8xf32> to vector<8x1xf32>
    %43 = tpu.reciprocal %42 : vector<8x1xf32> -> vector<8x1xf32>
    %44 = vector.broadcast %43 : vector<8x1xf32> to vector<8x8xf32>
    %45 = arith.mulf %40, %44 : vector<8x8xf32>
    %cst_25 = arith.constant dense<0.000000e+00> : vector<8x8xf32>
    %46 = tpu.matmul %45, %34, %cst_25 {dimension_numbers = #tpu.dot_dimension_numbers<[1], [0], [0], [1], [0, 0, 1, 1], [], []>} : vector<8x8xf32>, vector<8x8xf32>, vector<8x8xf32> -> vector<8x8xf32>
    %c1 = arith.constant 1 : index
    %c0_26 = arith.constant 0 : index
    %c0_27 = arith.constant 0 : index
    %47 = vector.load %arg7[%c1, %c0_26, %c0_27] : memref<4x8x32xf32, #tpu.memory_space<vmem>>, vector<1x8x32xf32>
    %48 = vector.shape_cast %47 : vector<1x8x32xf32> to vector<8x32xf32>
    %cst_28 = arith.constant dense<0.000000e+00> : vector<8x32xf32>
    %49 = tpu.matmul %46, %48, %cst_28 {dimension_numbers = #tpu.dot_dimension_numbers<[1], [0], [0], [1], [0, 0, 1, 1], [], []>} : vector<8x8xf32>, vector<8x32xf32>, vector<8x32xf32> -> vector<8x32xf32>
    %50 = arith.addf %30, %49 : vector<8x32xf32>
    %51 = arith.addf %31, %45 : vector<8x8xf32>
    %52 = vector.extract_strided_slice %9 {offsets = [0, 16], sizes = [8, 8], strides = [1, 1]} : vector<8x32xf32> to vector<8x8xf32>
    %c0_29 = arith.constant 0 : index
    %c16 = arith.constant 16 : index
    %53 = vector.load %arg11[%c0_29, %c16] : memref<8x64xf32, #tpu.memory_space<vmem>>, vector<8x8xf32>
    %c0_30 = arith.constant 0 : index
    %c48 = arith.constant 48 : index
    %54 = vector.load %arg11[%c0_30, %c48] : memref<8x64xf32, #tpu.memory_space<vmem>>, vector<8x8xf32>
    "tpu.trace_start"() <{level = 10 : i32, message = "qd,kd->qk"}> : () -> ()
    %cst_31 = arith.constant dense<0.000000e+00> : vector<8x8xf32>
    %55 = tpu.matmul %52, %53, %cst_31 {dimension_numbers = #tpu.dot_dimension_numbers<[1], [1], [0], [0], [0, 0, 1, 0], [], []>} : vector<8x8xf32>, vector<8x8xf32>, vector<8x8xf32> -> vector<8x8xf32>
    "tpu.trace_stop"() : () -> ()
    %cst_32 = arith.constant dense<0xFF800000> : vector<8xf32>
    %56 = vector.multi_reduction <maximumf>, %55, %cst_32 [1] : vector<8x8xf32> to vector<8xf32>
    %57 = vector.shape_cast %56 : vector<8xf32> to vector<8x1xf32>
    %58 = vector.broadcast %57 : vector<8x1xf32> to vector<8x8xf32>
    %59 = arith.subf %55, %58 : vector<8x8xf32>
    %60 = math.exp %59 : vector<8x8xf32>
    %cst_33 = arith.constant dense<0.000000e+00> : vector<8xf32>
    %61 = vector.multi_reduction <add>, %60, %cst_33 [1] : vector<8x8xf32> to vector<8xf32>
    %62 = vector.shape_cast %61 : vector<8xf32> to vector<8x1xf32>
    %63 = tpu.reciprocal %62 : vector<8x1xf32> -> vector<8x1xf32>
    %64 = vector.broadcast %63 : vector<8x1xf32> to vector<8x8xf32>
    %65 = arith.mulf %60, %64 : vector<8x8xf32>
    %cst_34 = arith.constant dense<0.000000e+00> : vector<8x8xf32>
    %66 = tpu.matmul %65, %54, %cst_34 {dimension_numbers = #tpu.dot_dimension_numbers<[1], [0], [0], [1], [0, 0, 1, 1], [], []>} : vector<8x8xf32>, vector<8x8xf32>, vector<8x8xf32> -> vector<8x8xf32>
    %c2 = arith.constant 2 : index
    %c0_35 = arith.constant 0 : index
    %c0_36 = arith.constant 0 : index
    %67 = vector.load %arg7[%c2, %c0_35, %c0_36] : memref<4x8x32xf32, #tpu.memory_space<vmem>>, vector<1x8x32xf32>
    %68 = vector.shape_cast %67 : vector<1x8x32xf32> to vector<8x32xf32>
    %cst_37 = arith.constant dense<0.000000e+00> : vector<8x32xf32>
    %69 = tpu.matmul %66, %68, %cst_37 {dimension_numbers = #tpu.dot_dimension_numbers<[1], [0], [0], [1], [0, 0, 1, 1], [], []>} : vector<8x8xf32>, vector<8x32xf32>, vector<8x32xf32> -> vector<8x32xf32>
    %70 = arith.addf %50, %69 : vector<8x32xf32>
    %71 = arith.addf %51, %65 : vector<8x8xf32>
    %72 = vector.extract_strided_slice %9 {offsets = [0, 24], sizes = [8, 8], strides = [1, 1]} : vector<8x32xf32> to vector<8x8xf32>
    %c0_38 = arith.constant 0 : index
    %c24 = arith.constant 24 : index
    %73 = vector.load %arg11[%c0_38, %c24] : memref<8x64xf32, #tpu.memory_space<vmem>>, vector<8x8xf32>
    %c0_39 = arith.constant 0 : index
    %c56 = arith.constant 56 : index
    %74 = vector.load %arg11[%c0_39, %c56] : memref<8x64xf32, #tpu.memory_space<vmem>>, vector<8x8xf32>
    "tpu.trace_start"() <{level = 10 : i32, message = "qd,kd->qk"}> : () -> ()
    %cst_40 = arith.constant dense<0.000000e+00> : vector<8x8xf32>
    %75 = tpu.matmul %72, %73, %cst_40 {dimension_numbers = #tpu.dot_dimension_numbers<[1], [1], [0], [0], [0, 0, 1, 0], [], []>} : vector<8x8xf32>, vector<8x8xf32>, vector<8x8xf32> -> vector<8x8xf32>
    "tpu.trace_stop"() : () -> ()
    %cst_41 = arith.constant dense<0xFF800000> : vector<8xf32>
    %76 = vector.multi_reduction <maximumf>, %75, %cst_41 [1] : vector<8x8xf32> to vector<8xf32>
    %77 = vector.shape_cast %76 : vector<8xf32> to vector<8x1xf32>
    %78 = vector.broadcast %77 : vector<8x1xf32> to vector<8x8xf32>
    %79 = arith.subf %75, %78 : vector<8x8xf32>
    %80 = math.exp %79 : vector<8x8xf32>
    %cst_42 = arith.constant dense<0.000000e+00> : vector<8xf32>
    %81 = vector.multi_reduction <add>, %80, %cst_42 [1] : vector<8x8xf32> to vector<8xf32>
    %82 = vector.shape_cast %81 : vector<8xf32> to vector<8x1xf32>
    %83 = tpu.reciprocal %82 : vector<8x1xf32> -> vector<8x1xf32>
    %84 = vector.broadcast %83 : vector<8x1xf32> to vector<8x8xf32>
    %85 = arith.mulf %80, %84 : vector<8x8xf32>
    %cst_43 = arith.constant dense<0.000000e+00> : vector<8x8xf32>
    %86 = tpu.matmul %85, %74, %cst_43 {dimension_numbers = #tpu.dot_dimension_numbers<[1], [0], [0], [1], [0, 0, 1, 1], [], []>} : vector<8x8xf32>, vector<8x8xf32>, vector<8x8xf32> -> vector<8x8xf32>
    %c3 = arith.constant 3 : index
    %c0_44 = arith.constant 0 : index
    %c0_45 = arith.constant 0 : index
    %87 = vector.load %arg7[%c3, %c0_44, %c0_45] : memref<4x8x32xf32, #tpu.memory_space<vmem>>, vector<1x8x32xf32>
    %88 = vector.shape_cast %87 : vector<1x8x32xf32> to vector<8x32xf32>
    %cst_46 = arith.constant dense<0.000000e+00> : vector<8x32xf32>
    %89 = tpu.matmul %86, %88, %cst_46 {dimension_numbers = #tpu.dot_dimension_numbers<[1], [0], [0], [1], [0, 0, 1, 1], [], []>} : vector<8x8xf32>, vector<8x32xf32>, vector<8x32xf32> -> vector<8x32xf32>
    %90 = arith.addf %70, %89 : vector<8x32xf32>
    %91 = arith.addf %71, %85 : vector<8x8xf32>
    %c0_47 = arith.constant 0 : index
    %c0_48 = arith.constant 0 : index
    %92 = vector.load %arg8[%c0_47, %c0_48] : memref<1x32xf32, #tpu.memory_space<vmem>>, vector<1x32xf32>
    %93 = vector.broadcast %92 : vector<1x32xf32> to vector<8x32xf32>
    %94 = arith.addf %90, %93 : vector<8x32xf32>
    %c0_49 = arith.constant 0 : index
    %c0_50 = arith.constant 0 : index
    %c0_51 = arith.constant 0 : index
    %95 = vector.load %arg9[%c0_49, %c0_50, %c0_51] : memref<1x8x32xf32, #tpu.memory_space<vmem>>, vector<1x8x32xf32>
    %96 = vector.shape_cast %95 : vector<1x8x32xf32> to vector<8x32xf32>
    %97 = vector.shape_cast %94 : vector<8x32xf32> to vector<1x8x32xf32>
    tpu.vector_store %arg9[%c0_49, %c0_50, %c0_51], %97 {strides = array<i32>} : memref<1x8x32xf32, #tpu.memory_space<vmem>>, vector<1x8x32xf32>,
    %cst_52 = arith.constant 2.500000e-01 : f32
    %98 = vector.broadcast %cst_52 : f32 to vector<8x8xf32>
    %99 = arith.mulf %91, %98 : vector<8x8xf32>
    %c0_53 = arith.constant 0 : index
    %c0_54 = arith.constant 0 : index
    %c0_55 = arith.constant 0 : index
    %100 = vector.load %arg10[%c0_53, %c0_54, %c0_55] : memref<1x8x8xf32, #tpu.memory_space<vmem>>, vector<1x8x8xf32>
    %101 = vector.shape_cast %100 : vector<1x8x8xf32> to vector<8x8xf32>
    %102 = vector.shape_cast %99 : vector<8x8xf32> to vector<1x8x8xf32>
    tpu.vector_store %arg10[%c0_53, %c0_54, %c0_55], %102 {strides = array<i32>} : memref<1x8x8xf32, #tpu.memory_space<vmem>>, vector<1x8x8xf32>,
    return
  }
  func.func @transform_0(%arg0: i32, %arg1: i32) -> (i32, i32, i32) {
    %c0_i32 = arith.constant 0 : i32
    %c0_i32_0 = arith.constant 0 : i32
    %c0_i32_1 = arith.constant 0 : i32
    return %arg0, %c0_i32, %c0_i32_0 : i32, i32, i32
  }
  func.func @transform_1(%arg0: i32, %arg1: i32) -> (i32, i32) {
    %c0_i32 = arith.constant 0 : i32
    %c0_i32_0 = arith.constant 0 : i32
    %c0_i32_1 = arith.constant 0 : i32
    return %c0_i32, %c0_i32_0 : i32, i32
  }
  func.func @transform_2(%arg0: i32, %arg1: i32) -> (i32, i32) {
    %c0_i32 = arith.constant 0 : i32
    %c0_i32_0 = arith.constant 0 : i32
    %c0_i32_1 = arith.constant 0 : i32
    return %c0_i32, %c0_i32_0 : i32, i32
  }
  func.func @transform_3(%arg0: i32, %arg1: i32) -> (i32, i32) {
    %c0_i32 = arith.constant 0 : i32
    %c0_i32_0 = arith.constant 0 : i32
    %c0_i32_1 = arith.constant 0 : i32
    return %c0_i32, %c0_i32_0 : i32, i32
  }
  func.func @transform_4(%arg0: i32, %arg1: i32) -> (i32, i32) {
    %c0_i32 = arith.constant 0 : i32
    %c0_i32_0 = arith.constant 0 : i32
    %c0_i32_1 = arith.constant 0 : i32
    return %c0_i32, %c0_i32_0 : i32, i32
  }
  func.func @transform_5(%arg0: i32, %arg1: i32) -> (i32, i32, i32) {
    %c0_i32 = arith.constant 0 : i32
    %c0_i32_0 = arith.constant 0 : i32
    %c0_i32_1 = arith.constant 0 : i32
    %c0_i32_2 = arith.constant 0 : i32
    return %c0_i32, %c0_i32_0, %c0_i32_1 : i32, i32, i32
  }
  func.func @transform_6(%arg0: i32, %arg1: i32) -> (i32, i32) {
    %c0_i32 = arith.constant 0 : i32
    %c0_i32_0 = arith.constant 0 : i32
    %c0_i32_1 = arith.constant 0 : i32
    return %c0_i32, %c0_i32_0 : i32, i32
  }
  func.func @transform_7(%arg0: i32, %arg1: i32) -> (i32, i32, i32) {
    %c0_i32 = arith.constant 0 : i32
    %c0_i32_0 = arith.constant 0 : i32
    return %arg0, %arg1, %c0_i32 : i32, i32, i32
  }
  func.func @transform_8(%arg0: i32, %arg1: i32) -> (i32, i32, i32) {
    %c0_i32 = arith.constant 0 : i32
    %c0_i32_0 = arith.constant 0 : i32
    return %arg0, %arg1, %c0_i32 : i32, i32, i32
  }
}

</mosaic_0001>

<bundles_post_ra>
// kernel: tpu_custom_call.1
= control target key start
LH: loop header
LB: loop body
LE: loop exit
PB: predicated region body
PF: predicated region fallthrough
CT: control target
= control target key end

     0   :  { %s1789_s0 = inlined_call_operand.hbm [shape: f32[2,8,32], index: 0, kind: input, shape index: {}]   ;;  %s1790_s1 = inlined_call_operand.hbm [shape: f32[32,32], index: 1, kind: input, shape index: {}]   ;;  %s1791_s2 = inlined_call_operand.vmem [shape: f32[1,32], index: 2, kind: input, shape index: {}]   ;;  %s1792_s3 = inlined_call_operand.hbm [shape: f32[32,64], index: 3, kind: input, shape index: {}]   ;;  %s1793_s4 = inlined_call_operand.vmem [shape: f32[1,64], index: 4, kind: input, shape index: {}]   ;;  %s1794_s5 = inlined_call_operand.hbm [shape: f32[4,8,32], index: 5, kind: input, shape index: {}]   ;;  %s1795_s6 = inlined_call_operand.vmem [shape: f32[1,32], index: 6, kind: input, shape index: {}]   ;;  %s1796_s7 = inlined_call_operand.hbm [shape: f32[2,8,32], index: 7, kind: output, shape index: {0}]   ;;  %s1797_s8 = inlined_call_operand.hbm [shape: f32[2,8,8], index: 8, kind: output, shape index: {1}]  }
   0x1   :  { %1798 = sst [smem:[#allocation19_spill]] %s1789_s0 }
   0x2   :  { %1799 = sst [smem:[#allocation20_spill]] %s1790_s1 }
   0x3   :  { %1800 = sst [smem:[#allocation21_spill]] %s1792_s3 }
   0x4   :  { %1801 = sst [smem:[#allocation22_spill]] %s1794_s5 }
   0x5   :  { %14 = vsyncpa [#allocation4], 0 }
   0x6   :  { %16 = vsyncpa [#allocation4 + $0x1], 0 }
   0x7   :  { %17 = vsyncpa [#allocation7], 0 }
   0x8   :  { %18 = vsyncpa [#allocation10], 0 }
   0x9   :  { %19 = vsyncpa [#allocation5], 0 }
   0xa   :  { %21 = vsyncpa [#allocation5 + $0x1], 0 }
   0xb   :  { %22 = vsyncpa [#allocation13], 0 }
   0xc   :  { %24 = vsyncpa [#allocation13 + $0x1], 0  ;;  %s1549_s27 = smov 0   ;;  %s1551_s28 = smov 0  }
   0xd   :  { %s1553_s29 = smov 0   ;;  %s1555_s30 = smov 0  }
   0xe   :  { %s1557_s9 = smov 0   ;;  %s1559_s10 = smov 0  }
   0xf LB: > { %s1082_s11 = sadd.s32 4294967295, %s1490_s10   ;;  %p1084_p0 = scmp.ge.s32.totalorder %s1490_s10, 1  ;;  %s1490_s10 = sphi %s1559_s10, %s30_s10   ;;  %s1486_s9 = sphi %s1557_s9, %s1817_s9   ;;  %s1482_s30 = sphi %s1555_s30, %s1816_s30   ;;  %s1478_s29 = sphi %s1553_s29, %s1815_s29   ;;  %s1474_s28 = sphi %s1551_s28, %s1814_s28   ;;  %s1470_s27 = sphi %s1549_s27, %s1813_s27  }
  0x10   : > { %p1583_p1 = scmp.eq.s32.totalorder %s1082_s11, 0  ;;  %p255_p2 = scmp.lt.s32.totalorder %s1490_s10, 3 }
  0x11   : > { %s1803_s1 = sld [smem:[#allocation20_spill]]  ;;  %s1492_s17 = smov [#allocation6]  }
  0x12   : > { %p1591_p3 = pnand %p1084_p0, %p255_p2  ;;  %s268_s18 = sshll.u32 %s1492_s17, 4  ;;  %s269_s18 = int_to_ptr.vmem [resolvable:$true] %s268_s18 }
  0x13   : > { %p1088_p6 = scmp.ge.s32.totalorder %s1490_s10, 2  ;;  %s1806_s3 = sld [smem:[#allocation21_spill]] }
  0x14   : > { %p1140_p4 = pneg %p1591_p3  ;;  %s1493_s23 = smov 128  }
  0x15   : > { %s1494_s24 = smov 8   ;;  %s1495_s25 = smov [#allocation8]  }
  0x16   : > { %p1599_p5 = pnand %p1140_p4, %p1583_p1  ;;  %s285_s26 = sshll.u32 %s1495_s25, 4  ;;  %s286_s26 = int_to_ptr.vmem [resolvable:$true] %s285_s26 }
  0x17   : > { %s266_s15 = sshll.u32 %s1803_s1, 4  ;;  %s1807_s5 = sld [smem:[#allocation22_spill]]  ;;  %s267_s15 = int_to_ptr.hbm [resolvable:$true] %s266_s15 }
  0x18   : > { %1143 = dma.hbm_to_vmem [thread:$0]  (!%p1599_p5), %s267_s15, 512, %s269_s18, [#allocation7], %s1493_s23, %s1493_s23, %s1494_s24  }
  0x19   : > { %s283_s22 = sshll.u32 %s1806_s3, 4  ;;  %s1496_s20 = smov [#allocation9]   ;;  %s284_s22 = int_to_ptr.hbm [resolvable:$true] %s283_s22 }
  0x1a   : > { %1146 = dma.hbm_to_vmem [thread:$0]  (!%p1599_p5), %s284_s22, 512, %s286_s26, [#allocation7], %s1493_s23, %s1493_s23, %s1494_s24  }
  0x1b   : > { %s302_s21 = sshll.u32 %s1496_s20, 4  ;;  %s1083_s15 = sadd.s32 4294967294, %s1490_s10   ;;  %s303_s21 = int_to_ptr.vmem [resolvable:$true] %s302_s21 }
  0x1c   : > { %s42_s18 = sadd.s32 1, %s1486_s9  ;;  %s49_s25 = sadd.s32 1, %s1478_s29 }
  0x1d   : > { %s300_s17 = sshll.u32 %s1807_s5, 4  ;;  %p44_p7 = scmp.ge.s32.totalorder %s42_s18, 2  ;;  %s301_s17 = int_to_ptr.hbm [resolvable:$true] %s300_s17 }
  0x1e   : > { %1149 = dma.hbm_to_vmem [thread:$0]  (!%p1599_p5), %s301_s17, 512, %s303_s21, [#allocation10], %s1493_s23, %s1493_s23, %s1494_s24  }
  0x1f   : > { %p56_p8 = scmp.ne.s32.totalorder %s1478_s29, %s1474_s28  ;;  %p57_p9 = scmp.eq.s32.totalorder %s1490_s10, 0 }
  0x20   : > { %p62_p10 = scmp.ne.s32.totalorder %s1474_s28, %s1470_s27  ;;  %s1819_s18 = smov (%p44_p7, %s42_s18), 0 }
  0x21   : > { %p1626_p11 = por %p57_p9, %p56_p8  ;;  %s46_s23 = ssub.s32 %s1486_s9, %s1819_s18 }
  0x22   : > { %p1632_p12 = por %p1583_p1, %p62_p10  ;;  %p214_p13 = scmp.eq.s32.totalorder %s1082_s11, 1 }
  0x23   : > { %p47_p0 = scmp.eq.s32.totalorder %s46_s23, 0  ;;  %p220_p2 = scmp.eq.s32.totalorder %s1083_s15, 1 }
  0x24   : > { %p1640_p4 = por %p214_p13, %p56_p8  ;;  %p1164_p5 = scmp.lt.s32.totalorder %s1490_s10, 2 }
  0x25   : > { %s1646_s26 = scalar_select %p47_p0, %s1478_s29, %s49_s25  }
  0x26   : > { %p1648_p7 = por %p220_p2, %p62_p10  ;;  %s319_s14 = sand.u32 1, %s1478_s29  }
  0x27   : > { %s1089_s17 = sshll.u32 %s319_s14, 3  ;;  %s1090_s20 = sshll.u32 %s1486_s9, 3 }
  0x28   : > { %s1812_s0 = sld [smem:[#allocation19_spill]]  ;;  %s323_s23 = scalar_lea.vmem [#allocation3], %s1089_s17 }
  0x29   : > { %s331_s15 = sshll.u32 %s323_s23, 4  ;;  %p1151_p8 = pnand %p1164_p5, %p1626_p11  ;;  %s332_s15 = int_to_ptr.vmem [resolvable:$true] %s331_s15 }
  0x2a   : > { %s320_s25 = scalar_lea.sflag [#allocation4], %s319_s14  ;;  %s1662_s5 = sand.u32 (!%p1591_p3), 1, %s1474_s28  }
  0x2b   : > { %s1665_s1 = sshll.u32 (!%p1591_p3), %s1662_s5, 3  ;;  %s343_s17 = scalar_lea.sflag (!%p1591_p3), [#allocation4], %s1662_s5 }
  0x2c   : > { %340 = sbr.rel (%p1591_p3) target bundleno = 1408 (0x580), region = 48 }
  0x2e   : > { %s327_s11 = scalar_lea.hbm %s1812_s0, %s1090_s20  ;;  %s346_s20 = scalar_lea.vmem (!%p1591_p3), [#allocation3], %s1665_s1 }
  0x2f   : > { %s329_s3 = sshll.u32 %s327_s11, 4  ;;  %s330_s3 = int_to_ptr.hbm [resolvable:$true] %s329_s3 }
  0x30   : > { %1153 = dma.hbm_to_vmem [thread:$0]  (!%p1151_p8), %s330_s3, 128, %s332_s15, %s320_s25  }
  0x31   : > { %1449 = dma.done.wait (%p1632_p12), %s343_s17, 128  }
  0x32   : > { %1451 = vsyncadd (%p1632_p12), %s343_s17, 4294967168 }
  0x33   : > { %1453 = dma.done.wait (%p1583_p1), [#allocation7], 1024  }
  0x34   : > { %1455 = vsyncadd (%p1583_p1), [#allocation7], 4294966272 }
  0x35   : > { %1457 = dma.done.wait (%p1583_p1), [#allocation10], 512  }
  0x36   : > { %1459 = vsyncadd (%p1583_p1), [#allocation10], 4294966784  ;;  %v408_v0 = vld [vmem:[#allocation8 + $0x18] sm:$0xff]  ;;  %v407_v2 = vld [vmem:[#allocation8 + $0x10] sm:$0xff]  ;;  %vm413_vm0 = vcmask 261120   ;;  %vm437_vm1 = vcmask 523264  }
  0x37   : > { %v443_v1 = vld [vmem:[#allocation6 + $0x18] sm:$0xff]  ;;  %429 = vmatpush.msra.mxu0 %v408_v0  ;;  %v442_v3 = vld [vmem:[#allocation6 + $0x10] sm:$0xff]  ;;  %v406_v4 = vld [vmem:[#allocation8 + $0x8] sm:$0xff]  ;;  %s1497_s19 = smov 120   ;;  %vm473_vm2 = vcmask 64512   ;;  %s1498_s14 = smov 112  }
  0x38   : > { %464 = vmatpush.msra.mxu1 %v443_v1  ;;  %v441_v5 = vld [vmem:[#allocation6 + $0x8] sm:$0xff]  ;;  %v405_v6 = vld [vmem:[#allocation8] sm:$0xff]  ;;  %v404_v8 = vld [vmem:[%s346_s20] sm:$0xff]  ;;  %s1499_s21 = smov 96   ;;  %s1500_s11 = smov 104  }
  0x39   : > { %430 = vmatpush.msra.mxu0 %v407_v2  ;;  %v440_v7 = vld [vmem:[#allocation6] sm:$0xff]  ;;  %v1229_v9 = vld [vmem:[%s1793_s4] ss:$0 sm:$0xff]  ;;  %s1501_s23 = smov 72   ;;  %s1502_s15 = smov 80  }
  0x3a   : > { %465 = vmatpush.msra.mxu1 %v442_v3  ;;  %v1230_v10 = vld [vmem:[%s1791_s2] ss:$0 sm:$0xff]  ;;  %v550_v25 = vld [vmem:[#allocation9] sm:$0xff]  ;;  %s1503_s25 = smov 88   ;;  %s399_s17 = scalar_lea.vmem [#allocation12], %s1665_s1 }
  0x3b   : > { %431 = vmatpush.msra.mxu0 %v406_v4  ;;  %s1118_s20 = sshll.u32 %s1482_s30, 3  ;;  %s937_s22 = sshll.u32 %s399_s17, 4  ;;  %s938_s22 = int_to_ptr.vmem [resolvable:$true] %s937_s22 }
  0x3c   : > { %466 = vmatpush.msra.mxu1 %v441_v5  ;;  %s935_s16 = scalar_lea.hbm %s1797_s8, %s1118_s20  ;;  %s1388_s30 = scalar_lea.hbm %s1797_s8, 16 }
  0x3d   : > { %432 = vmatpush.msra.mxu0 %v405_v6 }
  0x3e   : > { %467 = vmatpush.msra.mxu1 %v440_v7  ;;  %1098 = vmatmul.msk.f32.vlgmr.msra.gmra.mxu0 %vm413_vm0, %v404_v8 }
  0x3f   : > { %1099 = vmatmul.msk.f32.vlgmr.msra.gmra.mxu1 %vm413_vm0, %v404_v8 }
  0x40   : > { %675 = vmatpush.msrb.mxu1 %v550_v25 }
  0xbb   : > { %v434_v11 = vpop.f32.mrf.mxu0 }
  0xbc   : > { %v469_v12 = vpop.f32.mrf.mxu1  ;;  %v435_v13 = vadd.f32 %v1229_v9, %v434_v11 }
  0xbd   : > { %v470_v14 = vadd.f32 %v1230_v10, %v469_v12 }
  0xbe   : > { %438 = vst.msk [vmem:[#allocation2] sm:$0xff] %vm437_vm1, %v435_v13 }
  0xbf   : > { %553 = vrot.lane.b32.xlu2 %v470_v14, %s1497_s19 }
  0xc5   : > { %v1689_v15 = vld [vmem:[#allocation2] sm:$0xff] }
  0xc6   : > { %524 = vrot.lane.b32.xlu1 %v1689_v15, %s1499_s21  ;;  %1100 = vmatpush.xpose.msk.msra.mxu2 %vm473_vm2, %v1689_v15 }
  0xc7   : > { %685 = vrot.lane.b32.xlu2 %v1689_v15, %s1498_s14 }
  0xc9   : > { %1101 = vmatmul.msk.f32.vlgmr.msra.gmra.mxu2 %vm473_vm2, %v470_v14 }
  0xce   : > { %556 = vrot.lane.b32.xlu1 %v1689_v15, %s1497_s19  ;;  %s939_s19 = sshll.u32 %s935_s16, 4  ;;  %s940_s19 = int_to_ptr.hbm [resolvable:$true] %s939_s19 }
  0xcf   : > { %789 = vrot.lane.b32.xlu2 %v470_v14, %s1500_s11  ;;  %s1382_s21 = sshra.s32 %s940_s19, 4  ;;  %s1383_s21 = int_to_ptr.hbm [resolvable:$true] %s1382_s21 }
  0xd0   : > { %p1389_p10 = scmp.lt.s32.totalorder %s1383_s21, %s1797_s8 }
  0xd6   : > { %682 = vrot.lane.b32.xlu1 %v470_v14, %s1498_s14  ;;  %s909_s14 = scalar_lea.sflag [#allocation13], %s1662_s5 }
 0x119   : > { %v554_v29 = vpop.permute.xlu2 %553 }
 0x121   : > { %v686_v40 = vpop.permute.xlu2 %685 }
 0x129   : > { %v790_v43 = vpop.permute.xlu2 %789 }
 0x138   : > { %v525_v16 = vpop.permute.xlu1 %524 }
 0x139   : > { %545 = vmatpush.msra.mxu3 %v525_v16 }
 0x140   : > { %v557_v17 = vpop.permute.xlu1 %556 }
 0x141   : > { %1103 = vmatpush.xpose.msk.msrb.mxu3 %vm473_vm2, %v557_v17 }
 0x148   : > { %v683_v41 = vpop.permute.xlu1 %682 }
 0x14c   : > { %v497_v18 = vpop.f32.mrf.mxu2 }
 0x14d   : > { %v500_v19 = vsel %vm473_vm2, %v497_v18, -inf }
 0x14e   : > { %501 = vmax.xlane.f32.xlu0 %v500_v19 }
 0x1c1   : > { %v502_v20 = vpop.xlane.xlu0 %501 }
 0x1c2   : > { %v503_v21 = vsub.f32 %v497_v18, %v502_v20 }
 0x1c4   : > { %v504_v22 = vmul.f32 1.442695, %v503_v21 }
 0x1c6   : > { %1232 = vpow2.f32 %v504_v22 }
 0x1cc   : > { %v1233_v23 = vpop.eup %1232 }
 0x1cd   : > { %v506_v24 = vsel %vm473_vm2, %v1233_v23, 0.0 }
 0x1ce   : > { %507 = vadd.xlane.f32.xlu0 %v506_v24 }
 0x1e2   : > { %792 = vrot.lane.b32.xlu0 %v1689_v15, %s1500_s11  ;;  %s1384_s11 = scalar_lea.hbm %s1383_s21, 8 }
 0x1e3   : > { %p1385_p1 = scmp.ne.s32.totalorder %s1383_s21, %s1384_s11  ;;  %p1390_p11 = scmp.lt.s32.totalorder %s1388_s30, %s1384_s11 }
 0x1e5   : > { %p1386_p3 = pnand %p1385_p1, %p1640_p4  ;;  %p1391_p12 = por %p1390_p11, %p1389_p10 }
 0x1e7   : > { %p1387_p9 = pneg %p1386_p3 }
 0x1e9   : > { %p1392_p13 = pnand %p1391_p12, %p1387_p9 }
 0x241   : > { %v508_v26 = vpop.xlane.xlu0 %507 }
 0x242   : > { %1234 = vrcp.f32 %v508_v26  ;;  %v520_v31 = vand.u32 2147483648, %v508_v26  ;;  %v518_v33 = vand.u32 2147483647, %v508_v26  ;;  %vm514_vm4 = vweird.f32 %v508_v26 }
 0x244   : > { %v521_v35 = vor.u32 1.1754944e-38, %v520_v31  ;;  %vm519_vm6 = vcmp.eq.f32.partialorder %v518_v33, 8.507059e+37 }
 0x248   : > { %v1235_v27 = vpop.eup %1234 }
 0x249   : > { %v510_v28 = vmul.f32 %v1235_v27, %v508_v26  ;;  %vm515_vm3 = vweird.f32 %v1235_v27 }
 0x24a   : > { %vm516_vm5 = vmor %vm514_vm4, %vm515_vm3 }
 0x24b   : > { %v511_v30 = vsub.f32 1.0, %v510_v28 }
 0x24d   : > { %v512_v32 = vmul.f32 %v1235_v27, %v511_v30 }
 0x24f   : > { %v513_v34 = vadd.f32 %v1235_v27, %v512_v32 }
 0x251   : > { %v517_v36 = vsel %vm516_vm5, %v1235_v27, %v513_v34 }
 0x252   : > { %v522_v37 = vsel %vm519_vm6, %v521_v35, %v517_v36 }
 0x253   : > { %v1701_v38 = vmul.f32 %v1233_v23, %v522_v37 }
 0x254   : > { %v793_v39 = vpop.permute.xlu0 %792 }
 0x255   : > { %1102 = vmatmul.msk.f32.vlgmr.msra.gmra.mxu3 %vm473_vm2, %v1701_v38  ;;  %1112 = vmatpush.xpose.msk.msra.mxu1 %vm473_vm2, %v793_v39 }
 0x256   : > { %1108 = vmatpush.xpose.msk.msra.mxu3 %vm473_vm2, %v686_v40 }
 0x25d   : > { %1104 = vmatmul.msk.f32.vlgmr.msrb.gmra.mxu3 %vm473_vm2, %v554_v29 }
 0x265   : > { %1109 = vmatmul.msk.f32.vlgmr.msra.gmra.mxu3 %vm473_vm2, %v683_v41 }
 0x2d8   : > { %v547_v42 = vpop.f32.mrf.mxu3 }
 0x2d9   : > { %1107 = vmatmul.msk.f32.vlgmr.msrb.gmra.mxu1 %vm473_vm2, %v547_v42 }
 0x2e0   : > { %v579_v44 = vpop.f32.mrf.mxu3 }
 0x2e1   : > { %1113 = vmatmul.msk.f32.vlgmr.msra.gmra.mxu1 %vm473_vm2, %v790_v43  ;;  %v582_v45 = vsel %vm473_vm2, %v579_v44, -inf }
 0x2e2   : > { %583 = vmax.xlane.f32.xlu1 %v582_v45 }
 0x2e8   : > { %v708_v46 = vpop.f32.mrf.mxu3 }
 0x2e9   : > { %v711_v47 = vsel %vm473_vm2, %v708_v46, -inf }
 0x2ea   : > { %712 = vmax.xlane.f32.xlu0 %v711_v47  ;;  %v762_v47 = vld [vmem:[#allocation9 + $0x10] sm:$0xff] }
 0x2fe   : > { %842 = vrot.lane.b32.xlu0 %v1689_v15, %s1501_s23 }
 0x355   : > { %v584_v48 = vpop.xlane.xlu1 %583 }
 0x356   : > { %v585_v49 = vsub.f32 %v579_v44, %v584_v48  ;;  %v1714_v50 = vpop.f32.mrf.mxu1 }
 0x358   : > { %v586_v51 = vmul.f32 1.442695, %v585_v49 }
 0x35a   : > { %1236 = vpow2.f32 %v586_v51 }
 0x35d   : > { %v713_v52 = vpop.xlane.xlu0 %712 }
 0x35e   : > { %v714_v53 = vsub.f32 %v708_v46, %v713_v52  ;;  %v815_v54 = vpop.f32.mrf.mxu1  ;;  %v633_v46 = vld [vmem:[#allocation9 + $0x8] sm:$0xff] }
 0x35f   : > { %v818_v55 = vsel %vm473_vm2, %v815_v54, -inf  ;;  %652 = vmatpush.msrb.mxu0 %v633_v46 }
 0x360   : > { %819 = vmax.xlane.f32.xlu2 %v818_v55  ;;  %v715_v56 = vmul.f32 1.442695, %v714_v53  ;;  %v1237_v57 = vpop.eup %1236 }
 0x361   : > { %v588_v58 = vsel %vm473_vm2, %v1237_v57, 0.0  ;;  %781 = vmatpush.msra.mxu0 %v762_v47 }
 0x362   : > { %1238 = vpow2.f32 %v715_v56 }
 0x368   : > { %589 = vadd.xlane.f32.xlu2 %v588_v58  ;;  %v1239_v59 = vpop.eup %1238 }
 0x369   : > { %v717_v60 = vsel %vm473_vm2, %v1239_v59, 0.0 }
 0x370   : > { %718 = vadd.xlane.f32.xlu2 %v717_v60  ;;  %v843_v61 = vpop.permute.xlu0 %842 }
 0x371   : > { %863 = vmatpush.msrb.mxu3 %v843_v61 }
 0x388   : > { %735 = vrot.lane.b32.xlu2 %v1689_v15, %s1502_s15 }
 0x3d3   : > { %v820_v62 = vpop.xlane.xlu2 %819 }
 0x3d4   : > { %v821_v63 = vsub.f32 %v815_v54, %v820_v62 }
 0x3d6   : > { %v822_v0 = vmul.f32 1.442695, %v821_v63 }
 0x3d8   : > { %1240 = vpow2.f32 %v822_v0 }
 0x3db   : > { %v590_v3 = vpop.xlane.xlu2 %589 }
 0x3dc   : > { %1242 = vrcp.f32 %v590_v3  ;;  %v602_v16 = vand.u32 2147483648, %v590_v3  ;;  %vm596_vm8 = vweird.f32 %v590_v3  ;;  %v600_v17 = vand.u32 2147483647, %v590_v3 }
 0x3de   : > { %v1241_v1 = vpop.eup %1240  ;;  %v603_v22 = vor.u32 1.1754944e-38, %v602_v16  ;;  %vm601_vm13 = vcmp.eq.f32.partialorder %v600_v17, 8.507059e+37 }
 0x3df   : > { %v824_v2 = vsel %vm473_vm2, %v1241_v1, 0.0 }
 0x3e0   : > { %825 = vadd.xlane.f32.xlu1 %v824_v2 }
 0x3e2   : > { %v1243_v5 = vpop.eup %1242 }
 0x3e3   : > { %v719_v4 = vpop.xlane.xlu2 %718  ;;  %v592_v7 = vmul.f32 %v1243_v5, %v590_v3  ;;  %vm597_vm7 = vweird.f32 %v1243_v5 }
 0x3e4   : > { %1244 = vrcp.f32 %v719_v4  ;;  %vm598_vm10 = vmor %vm596_vm8, %vm597_vm7  ;;  %v731_v18 = vand.u32 2147483648, %v719_v4  ;;  %vm725_vm11 = vweird.f32 %v719_v4  ;;  %v729_v19 = vand.u32 2147483647, %v719_v4 }
 0x3e5   : > { %v593_v9 = vsub.f32 1.0, %v592_v7 }
 0x3e6   : > { %v732_v25 = vor.u32 1.1754944e-38, %v731_v18  ;;  %vm730_vm14 = vcmp.eq.f32.partialorder %v729_v19, 8.507059e+37 }
 0x3e7   : > { %v594_v11 = vmul.f32 %v1243_v5, %v593_v9 }
 0x3e9   : > { %v595_v14 = vadd.f32 %v1243_v5, %v594_v11 }
 0x3ea   : > { %v1245_v6 = vpop.eup %1244 }
 0x3eb   : > { %v721_v8 = vmul.f32 %v1245_v6, %v719_v4  ;;  %vm726_vm9 = vweird.f32 %v1245_v6  ;;  %v599_v20 = vsel %vm598_vm10, %v1243_v5, %v595_v14  ;;  %v736_v45 = vpop.permute.xlu2 %735 }
 0x3ec   : > { %vm727_vm12 = vmor %vm725_vm11, %vm726_vm9  ;;  %v604_v26 = vsel %vm601_vm13, %v603_v22, %v599_v20 }
 0x3ed   : > { %v722_v10 = vsub.f32 1.0, %v721_v8  ;;  %v605_v32 = vmul.f32 %v1237_v57, %v604_v26 }
 0x3ef   : > { %v723_v12 = vmul.f32 %v1245_v6, %v722_v10  ;;  %v680_v37 = vadd.f32 %v605_v32, %v1701_v38  ;;  %v869_v38 = vld [vmem:[#allocation9 + $0x18] sm:$0xff] }
 0x3f9   : > { %606 = vrot.lane.b32.xlu1 %v1689_v15, %s1503_s25  ;;  %v724_v15 = vadd.f32 %v1245_v6, %v723_v12 }
 0x3fb   : > { %v728_v23 = vsel %vm727_vm12, %v1245_v6, %v724_v15 }
 0x3fc   : > { %v733_v28 = vsel %vm730_vm14, %v732_v25, %v728_v23 }
 0x3fd   : > { %v734_v33 = vmul.f32 %v1239_v59, %v733_v28 }
 0x3ff   : > { %v787_v41 = vadd.f32 %v734_v33, %v680_v37 }
 0x453   : > { %v826_v13 = vpop.xlane.xlu1 %825 }
 0x454   : > { %1246 = vrcp.f32 %v826_v13  ;;  %v838_v29 = vand.u32 2147483648, %v826_v13  ;;  %v836_v31 = vand.u32 2147483647, %v826_v13  ;;  %vm832_vm1 = vweird.f32 %v826_v13 }
 0x456   : > { %v839_v35 = vor.u32 1.1754944e-38, %v838_v29  ;;  %vm837_vm4 = vcmp.eq.f32.partialorder %v836_v31, 8.507059e+37 }
 0x45a   : > { %v1247_v21 = vpop.eup %1246 }
 0x45b   : > { %v828_v24 = vmul.f32 %v1247_v21, %v826_v13  ;;  %vm833_vm15 = vweird.f32 %v1247_v21 }
 0x45c   : > { %vm834_vm3 = vmor %vm832_vm1, %vm833_vm15 }
 0x45d   : > { %v829_v27 = vsub.f32 1.0, %v828_v24 }
 0x45f   : > { %v830_v30 = vmul.f32 %v1247_v21, %v829_v27 }
 0x461   : > { %v831_v34 = vadd.f32 %v1247_v21, %v830_v30 }
 0x463   : > { %v835_v36 = vsel %vm834_vm3, %v1247_v21, %v831_v34 }
 0x464   : > { %v840_v39 = vsel %vm837_vm4, %v839_v35, %v835_v36 }
 0x465   : > { %v841_v40 = vmul.f32 %v1241_v1, %v840_v39 }
 0x467   : > { %1114 = vmatmul.msk.f32.vlgmr.msrb.gmra.mxu3 %vm473_vm2, %v841_v40  ;;  %v894_v42 = vadd.f32 %v841_v40, %v787_v41 }
 0x469   : > { %v901_v43 = vmul.f32 0.25, %v894_v42 }
 0x46b   : > { %v607_v44 = vpop.permute.xlu1 %606  ;;  %902 = vst.msk [vmem:[%s399_s17] sm:$0xff] %vm473_vm2, %v901_v43 }
 0x46c   : > { %627 = vmatpush.msrb.mxu2 %v607_v44 }
 0x46d   : > { %1105 = vmatmul.msk.f32.vlgmr.msrb.gmra.mxu2 %vm473_vm2, %v605_v32 }
 0x46e   : > { %756 = vmatpush.msra.mxu2 %v736_v45 }
 0x470   : > { %888 = vmatpush.msrb.mxu2 %v869_v38 }
 0x475   : > { %1110 = vmatmul.msk.f32.vlgmr.msra.gmra.mxu2 %vm473_vm2, %v734_v33 }
 0x4ea   : > { %v865_v48 = vpop.f32.mrf.mxu3 }
 0x4eb   : > { %1115 = vmatmul.msk.f32.vlgmr.msrb.gmra.mxu2 %vm473_vm2, %v865_v48 }
 0x4f0   : > { %v629_v49 = vpop.f32.mrf.mxu2 }
 0x4f1   : > { %1106 = vmatmul.msk.f32.vlgmr.msrb.gmra.mxu0 %vm473_vm2, %v629_v49 }
 0x4f8   : > { %v758_v51 = vpop.f32.mrf.mxu2 }
 0x4f9   : > { %1111 = vmatmul.msk.f32.vlgmr.msra.gmra.mxu0 %vm473_vm2, %v758_v51 }
 0x4fa   : > { %1395 = shalt.err (!%p1392_p13)
}
 0x4fb   : > { %1137 = dma.vmem_to_hbm [thread:$0]  (%p1640_p4), %s938_s22, 128, %s940_s19, %s909_s14   ;;  %v1231_v56 = vld [vmem:[%s1795_s6] ss:$0 sm:$0xff] }
 0x4fc   : > { %s920_s12 = scalar_lea.hbm %s1796_s7, %s1118_s20  ;;  %s392_s21 = scalar_lea.vmem [#allocation11], %s1665_s1 }
 0x4fd   : > { %s922_s11 = sshll.u32 %s392_s21, 4  ;;  %s924_s23 = sshll.u32 %s920_s12, 4  ;;  %s923_s11 = int_to_ptr.vmem [resolvable:$true] %s922_s11  ;;  %s925_s23 = int_to_ptr.hbm [resolvable:$true] %s924_s23 }
 0x4fe   : > { %s904_s22 = scalar_lea.sflag [#allocation5], %s1662_s5  ;;  %s1410_s19 = sshra.s32 %s925_s23, 4  ;;  %s1411_s19 = int_to_ptr.hbm [resolvable:$true] %s1410_s19 }
 0x4ff   : > { %s1412_s20 = scalar_lea.hbm %s1411_s19, 8  ;;  %s1416_s1 = scalar_lea.hbm %s1796_s7, 16 }
 0x500   : > { %p1413_p0 = scmp.ne.s32.totalorder %s1411_s19, %s1412_s20  ;;  %p1417_p8 = scmp.lt.s32.totalorder %s1411_s19, %s1796_s7 }
 0x501   : > { %p1418_p1 = scmp.lt.s32.totalorder %s1416_s1, %s1412_s20 }
 0x502   : > { %p1414_p2 = pnand %p1413_p0, %p1640_p4 }
 0x503   : > { %p1419_p3 = por %p1418_p1, %p1417_p8 }
 0x504   : > { %p1415_p5 = pneg %p1414_p2 }
 0x506   : > { %p1420_p9 = pnand %p1419_p3, %p1415_p5 }
 0x56e   : > { %v654_v52 = vpop.f32.mrf.mxu0  ;;  %v890_v57 = vpop.f32.mrf.mxu2 }
 0x56f   : > { %v678_v53 = vadd.f32 %v1714_v50, %v654_v52 }
 0x576   : > { %v783_v54 = vpop.f32.mrf.mxu0 }
 0x577   : > { %v786_v55 = vadd.f32 %v783_v54, %v678_v53 }
 0x579   : > { %v893_v58 = vadd.f32 %v890_v57, %v786_v55 }
 0x57b   : > { %v899_v59 = vadd.f32 %v1231_v56, %v893_v58 }
 0x57d   : > { %900 = vst.msk [vmem:[%s392_s21] sm:$0xff] %vm413_vm0, %v899_v59 }
 0x57e   : > { %1423 = shalt.err (!%p1420_p9)
}
 0x57f   : > { %1136 = dma.vmem_to_hbm [thread:$0]  (%p1640_p4), %s923_s11, 128, %s925_s23, %s904_s22  }
 0x580 PF: > { %s951_s5 = sand.u32 1, %s1470_s27   ;;  %p1155_p10 = pnand %p1088_p6, %p1648_p7 }
 0x581   : > { %s952_s17 = scalar_lea.sflag [#allocation5], %s951_s5 }
 0x582   : > { %p1156_p11 = pneg %p1155_p10 }
 0x584   : > { %1461 = dma.done.wait (%p1156_p11), %s952_s17, 128  }
 0x585   : > { %1463 = vsyncadd (%p1156_p11), %s952_s17, 4294967168  ;;  %s962_s3 = scalar_lea.sflag [#allocation13], %s951_s5 }
 0x586   : > { %1465 = dma.done.wait (%p1156_p11), %s962_s3, 128  }
 0x587   : > { %1467 = vsyncadd (%p1156_p11), %s962_s3, 4294967168  ;;  %s30_s10 = sadd.s32 1, %s1490_s10   ;;  %s1813_s27 = smov %s1474_s28 }
 0x588   : > { %p27_p12 = scmp.ge.s32.totalorder %s30_s10, 4   ;;  %s1814_s28 = smov %s1478_s29 }
 0x589   : > { %s1815_s29 = smov %s1646_s26  ;;  %s1816_s30 = smov %s1486_s9 }
 0x58a   : > { %s1817_s9 = smov %s1819_s18  ;;  %29 = sbr.rel (!%p27_p12) target bundleno = 15 (0xf), region = 129 }
 0x58f   :  { %968 = vsyncpa [#allocation4], 1 }
 0x590   :  { %970 = vsyncpa [#allocation4 + $0x1], 1 }
 0x591   :  { %971 = vsyncpa [#allocation7], 1 }
 0x592   :  { %972 = vsyncpa [#allocation10], 1 }
 0x593   :  { %973 = vsyncpa [#allocation5], 1 }
 0x594   :  { %975 = vsyncpa [#allocation5 + $0x1], 1 }
 0x595   :  { %976 = vsyncpa [#allocation13], 1 }
 0x596   :  { %978 = vsyncpa [#allocation13 + $0x1], 1 }

</bundles_post_ra>
